<compile_context>
chip_gen: v7x
topology: tpu7x:2x2x1
jax: 0.10.0
libtpu: 0.0.40
codegen_flags: <defaults>
</compile_context>

<pallas_src>
import functools

import jax
import jax.numpy as jnp
from jax import lax
from jax.experimental import pallas as pl
from jax.experimental.pallas import tpu as pltpu


# ----------------------------------------------------------------------------
# Fused autoencoder kernel.
# x_ref: (tm, in)   weights in PyTorch layout (out, in), biases as (1, out).
# Writes decoded (tm, out_size) and encoded (tm, hidden//2).
# ----------------------------------------------------------------------------
def _prompt_ae_kernel(x_ref,
                      w1_ref, b1_ref, w2_ref, b2_ref,
                      w3_ref, b3_ref, w4_ref, b4_ref,
                      dec_ref, enc_ref):
    def linear(h, w_ref, b_ref):
        # h: (tm, K), w: (O, K)  -> (tm, O); contraction on w's 2nd axis keeps
        # the PyTorch weight layout (no transpose anywhere).
        return lax.dot_general(
            h, w_ref[...], (((1,), (1,)), ((), ())),
            preferred_element_type=jnp.float32,
        ) + b_ref[...]

    x = x_ref[...].astype(jnp.float32)                 # (tm, 12)
    h1 = jnp.maximum(linear(x, w1_ref, b1_ref), 0.0)   # (tm, 144)
    enc = linear(h1, w2_ref, b2_ref)                   # (tm, 72)
    h2 = jnp.maximum(linear(enc, w3_ref, b3_ref), 0.0) # (tm, 144)
    dec = linear(h2, w4_ref, b4_ref)                   # (tm, 12)

    enc_ref[...] = enc.astype(enc_ref.dtype)
    dec_ref[...] = dec.astype(dec_ref.dtype)


def _round_up(n, m):
    return ((n + m - 1) // m) * m


def prompt_autoencoder_forward(x, params, *, tm_max=1024):
    """Forward pass. x: (..., input_size). Returns (decoded, encoded_t, encoded_s)."""
    w1, b1, w2, b2, w3, b3, w4, b4 = params
    in_dim = w1.shape[1]
    hid = w1.shape[0]
    lat = w2.shape[0]
    out_dim = w4.shape[0]

    lead = x.shape[:-1]
    x2d = x.reshape(-1, in_dim).astype(jnp.float32)
    M = x2d.shape[0]

    # Largest-tile policy: single block when the problem is small, otherwise
    # 1024-row tiles (>= 2 parallel blocks -> both TCs on v7x).
    tm = min(_round_up(M, 8), tm_max)
    m_pad = _round_up(M, tm)
    if m_pad != M:
        x2d = jnp.pad(x2d, ((0, m_pad - M), (0, 0)))

    grid = (m_pad // tm,)

    full = lambda a: pl.BlockSpec(a.shape, lambda i: (0,) * a.ndim)
    b1r, b2r, b3r, b4r = (b.reshape(1, -1) for b in (b1, b2, b3, b4))

    dec2d, enc2d = pl.pallas_call(
        _prompt_ae_kernel,
        out_shape=(
            jax.ShapeDtypeStruct((m_pad, out_dim), jnp.float32),
            jax.ShapeDtypeStruct((m_pad, lat), jnp.float32),
        ),
        grid_spec=pltpu.PrefetchScalarGridSpec(
            num_scalar_prefetch=0,
            grid=grid,
            in_specs=[
                pl.BlockSpec((tm, in_dim), lambda i: (i, 0)),
                full(w1), full(b1r),
                full(w2), full(b2r),
                full(w3), full(b3r),
                full(w4), full(b4r),
            ],
            out_specs=(
                pl.BlockSpec((tm, out_dim), lambda i: (i, 0)),
                pl.BlockSpec((tm, lat), lambda i: (i, 0)),
            ),
        ),
        compiler_params=pltpu.CompilerParams(
            dimension_semantics=("parallel",),
            vmem_limit_bytes=32 * 1024 * 1024,
        ),
    )(x2d, w1, b1r, w2, b2r, w3, b3r, w4, b4r)

    decoded = dec2d[:M].reshape(*lead, out_dim)
    encoded = enc2d[:M].reshape(*lead, lat)
    # PyTorch forward returns the same encoded tensor twice.
    return decoded, encoded, encoded


def init_params(key, input_size=12, hidden_size=144, output_size=12):
    """Deterministic synthetic nn.Linear-shaped params (PyTorch (out, in) layout)."""
    half = hidden_size // 2
    dims = [
        (hidden_size, input_size),   # encoder[0]
        (half, hidden_size),         # encoder[2]
        (hidden_size, half),         # decoder[0]
        (output_size, hidden_size),  # decoder[2]
    ]
    params = []
    for (o, i) in dims:
        key, kw, kb = jax.random.split(key, 3)
        bound = 1.0 / jnp.sqrt(i)
        params.append(jax.random.uniform(kw, (o, i), jnp.float32, -bound, bound))
        params.append(jax.random.uniform(kb, (o,), jnp.float32, -bound, bound))
    return tuple(params)


if __name__ == "__main__":
    input_size, hidden_size, output_size = 12, 144, 12
    B, S = 2, 64                                  # small example: (2, 64, 12)

    key = jax.random.PRNGKey(0)
    k_p, k_x = jax.random.split(key)
    params = init_params(k_p, input_size, hidden_size, output_size)
    x = jax.random.normal(k_x, (B, S, input_size), jnp.float32)

    fwd = jax.jit(functools.partial(prompt_autoencoder_forward, tm_max=1024))
    decoded, enc_t, enc_s = fwd(x, params)
    jax.block_until_ready((decoded, enc_t, enc_s))

    assert decoded.shape == (B, S, output_size)
    assert enc_t.shape == (B, S, hidden_size // 2)
    assert enc_s.shape == (B, S, hidden_size // 2)

    # sanity check against plain-JAX reference
    def ref_fwd(x2d, p):
        w1, b1, w2, b2, w3, b3, w4, b4 = p
        h1 = jnp.maximum(x2d @ w1.T + b1, 0.0)
        enc = h1 @ w2.T + b2
        h2 = jnp.maximum(enc @ w3.T + b3, 0.0)
        dec = h2 @ w4.T + b4
        return dec, enc

    dec_ref, enc_ref = ref_fwd(x.reshape(-1, input_size), params)
    assert jnp.allclose(decoded.reshape(-1, output_size), dec_ref, atol=1e-4, rtol=1e-4)
    assert jnp.allclose(enc_t.reshape(-1, hidden_size // 2), enc_ref, atol=1e-4, rtol=1e-4)

    print("KERNEL_OK")
</pallas_src>

<mosaic_0001>
module attributes {stable_mosaic.version = 11 : i64} {
  func.func @_prompt_ae_kernel(%arg0: i32, %arg1: memref<128x12xf32, #tpu.memory_space<vmem>>, %arg2: memref<144x12xf32, #tpu.memory_space<vmem>>, %arg3: memref<1x144xf32, #tpu.memory_space<vmem>>, %arg4: memref<72x144xf32, #tpu.memory_space<vmem>>, %arg5: memref<1x72xf32, #tpu.memory_space<vmem>>, %arg6: memref<144x72xf32, #tpu.memory_space<vmem>>, %arg7: memref<1x144xf32, #tpu.memory_space<vmem>>, %arg8: memref<12x144xf32, #tpu.memory_space<vmem>>, %arg9: memref<1x12xf32, #tpu.memory_space<vmem>>, %arg10: memref<128x12xf32, #tpu.memory_space<vmem>>, %arg11: memref<128x72xf32, #tpu.memory_space<vmem>>) attributes {dimension_semantics = [#tpu.dimension_semantics<parallel>], iteration_bounds = array<i64: 1>, scalar_prefetch = 0 : i64, scratch_operands = 0 : i64, tpu.core_type = #tpu.core_type<tc>, window_params = [{transform_indices = @transform_0, window_bounds = array<i64: 128, 12>}, {pipeline_mode = #tpu.pipeline_mode<synchronous>, transform_indices = @transform_1, window_bounds = array<i64: 144, 12>}, {pipeline_mode = #tpu.pipeline_mode<synchronous>, transform_indices = @transform_2, window_bounds = array<i64: 1, 144>}, {pipeline_mode = #tpu.pipeline_mode<synchronous>, transform_indices = @transform_3, window_bounds = array<i64: 72, 144>}, {pipeline_mode = #tpu.pipeline_mode<synchronous>, transform_indices = @transform_4, window_bounds = array<i64: 1, 72>}, {pipeline_mode = #tpu.pipeline_mode<synchronous>, transform_indices = @transform_5, window_bounds = array<i64: 144, 72>}, {pipeline_mode = #tpu.pipeline_mode<synchronous>, transform_indices = @transform_6, window_bounds = array<i64: 1, 144>}, {pipeline_mode = #tpu.pipeline_mode<synchronous>, transform_indices = @transform_7, window_bounds = array<i64: 12, 144>}, {pipeline_mode = #tpu.pipeline_mode<synchronous>, transform_indices = @transform_8, window_bounds = array<i64: 1, 12>}, {transform_indices = @transform_9, window_bounds = array<i64: 128, 12>}, {transform_indices = @transform_10, window_bounds = array<i64: 128, 72>}]} {
    %c0 = arith.constant 0 : index
    %c0_0 = arith.constant 0 : index
    %0 = vector.load %arg1[%c0, %c0_0] : memref<128x12xf32, #tpu.memory_space<vmem>>, vector<128x12xf32>
    %c0_1 = arith.constant 0 : index
    %c0_2 = arith.constant 0 : index
    %1 = vector.load %arg2[%c0_1, %c0_2] : memref<144x12xf32, #tpu.memory_space<vmem>>, vector<144x12xf32>
    %cst = arith.constant dense<0.000000e+00> : vector<128x144xf32>
    %2 = tpu.matmul %0, %1, %cst {dimension_numbers = #tpu.dot_dimension_numbers<[1], [1], [0], [0], [0, 0, 1, 0], [], []>} : vector<128x12xf32>, vector<144x12xf32>, vector<128x144xf32> -> vector<128x144xf32>
    %c0_3 = arith.constant 0 : index
    %c0_4 = arith.constant 0 : index
    %3 = vector.load %arg3[%c0_3, %c0_4] : memref<1x144xf32, #tpu.memory_space<vmem>>, vector<1x144xf32>
    %4 = vector.broadcast %3 : vector<1x144xf32> to vector<128x144xf32>
    %5 = arith.addf %2, %4 : vector<128x144xf32>
    %cst_5 = arith.constant 0.000000e+00 : f32
    %6 = vector.broadcast %cst_5 : f32 to vector<128x144xf32>
    %7 = arith.maximumf %5, %6 : vector<128x144xf32>
    %c0_6 = arith.constant 0 : index
    %c0_7 = arith.constant 0 : index
    %8 = vector.load %arg4[%c0_6, %c0_7] : memref<72x144xf32, #tpu.memory_space<vmem>>, vector<72x144xf32>
    %cst_8 = arith.constant dense<0.000000e+00> : vector<128x72xf32>
    %9 = tpu.matmul %7, %8, %cst_8 {dimension_numbers = #tpu.dot_dimension_numbers<[1], [1], [0], [0], [0, 0, 1, 0], [], []>} : vector<128x144xf32>, vector<72x144xf32>, vector<128x72xf32> -> vector<128x72xf32>
    %c0_9 = arith.constant 0 : index
    %c0_10 = arith.constant 0 : index
    %10 = vector.load %arg5[%c0_9, %c0_10] : memref<1x72xf32, #tpu.memory_space<vmem>>, vector<1x72xf32>
    %11 = vector.broadcast %10 : vector<1x72xf32> to vector<128x72xf32>
    %12 = arith.addf %9, %11 : vector<128x72xf32>
    %c0_11 = arith.constant 0 : index
    %c0_12 = arith.constant 0 : index
    %13 = vector.load %arg6[%c0_11, %c0_12] : memref<144x72xf32, #tpu.memory_space<vmem>>, vector<144x72xf32>
    %cst_13 = arith.constant dense<0.000000e+00> : vector<128x144xf32>
    %14 = tpu.matmul %12, %13, %cst_13 {dimension_numbers = #tpu.dot_dimension_numbers<[1], [1], [0], [0], [0, 0, 1, 0], [], []>} : vector<128x72xf32>, vector<144x72xf32>, vector<128x144xf32> -> vector<128x144xf32>
    %c0_14 = arith.constant 0 : index
    %c0_15 = arith.constant 0 : index
    %15 = vector.load %arg7[%c0_14, %c0_15] : memref<1x144xf32, #tpu.memory_space<vmem>>, vector<1x144xf32>
    %16 = vector.broadcast %15 : vector<1x144xf32> to vector<128x144xf32>
    %17 = arith.addf %14, %16 : vector<128x144xf32>
    %cst_16 = arith.constant 0.000000e+00 : f32
    %18 = vector.broadcast %cst_16 : f32 to vector<128x144xf32>
    %19 = arith.maximumf %17, %18 : vector<128x144xf32>
    %c0_17 = arith.constant 0 : index
    %c0_18 = arith.constant 0 : index
    %20 = vector.load %arg8[%c0_17, %c0_18] : memref<12x144xf32, #tpu.memory_space<vmem>>, vector<12x144xf32>
    %cst_19 = arith.constant dense<0.000000e+00> : vector<128x12xf32>
    %21 = tpu.matmul %19, %20, %cst_19 {dimension_numbers = #tpu.dot_dimension_numbers<[1], [1], [0], [0], [0, 0, 1, 0], [], []>} : vector<128x144xf32>, vector<12x144xf32>, vector<128x12xf32> -> vector<128x12xf32>
    %c0_20 = arith.constant 0 : index
    %c0_21 = arith.constant 0 : index
    %22 = vector.load %arg9[%c0_20, %c0_21] : memref<1x12xf32, #tpu.memory_space<vmem>>, vector<1x12xf32>
    %23 = vector.broadcast %22 : vector<1x12xf32> to vector<128x12xf32>
    %24 = arith.addf %21, %23 : vector<128x12xf32>
    %c0_22 = arith.constant 0 : index
    %c0_23 = arith.constant 0 : index
    %25 = vector.load %arg11[%c0_22, %c0_23] : memref<128x72xf32, #tpu.memory_space<vmem>>, vector<128x72xf32>
    tpu.vector_store %arg11[%c0_22, %c0_23], %12 {strides = array<i32>} : memref<128x72xf32, #tpu.memory_space<vmem>>, vector<128x72xf32>,
    %c0_24 = arith.constant 0 : index
    %c0_25 = arith.constant 0 : index
    %26 = vector.load %arg10[%c0_24, %c0_25] : memref<128x12xf32, #tpu.memory_space<vmem>>, vector<128x12xf32>
    tpu.vector_store %arg10[%c0_24, %c0_25], %24 {strides = array<i32>} : memref<128x12xf32, #tpu.memory_space<vmem>>, vector<128x12xf32>,
    return
  }
  func.func @transform_0(%arg0: i32) -> (i32, i32) {
    %c0_i32 = arith.constant 0 : i32
    %c0_i32_0 = arith.constant 0 : i32
    return %arg0, %c0_i32 : i32, i32
  }
  func.func @transform_1(%arg0: i32) -> (i32, i32) {
    %c0_i32 = arith.constant 0 : i32
    %c0_i32_0 = arith.constant 0 : i32
    %c0_i32_1 = arith.constant 0 : i32
    return %c0_i32, %c0_i32_0 : i32, i32
  }
  func.func @transform_2(%arg0: i32) -> (i32, i32) {
    %c0_i32 = arith.constant 0 : i32
    %c0_i32_0 = arith.constant 0 : i32
    %c0_i32_1 = arith.constant 0 : i32
    return %c0_i32, %c0_i32_0 : i32, i32
  }
  func.func @transform_3(%arg0: i32) -> (i32, i32) {
    %c0_i32 = arith.constant 0 : i32
    %c0_i32_0 = arith.constant 0 : i32
    %c0_i32_1 = arith.constant 0 : i32
    return %c0_i32, %c0_i32_0 : i32, i32
  }
  func.func @transform_4(%arg0: i32) -> (i32, i32) {
    %c0_i32 = arith.constant 0 : i32
    %c0_i32_0 = arith.constant 0 : i32
    %c0_i32_1 = arith.constant 0 : i32
    return %c0_i32, %c0_i32_0 : i32, i32
  }
  func.func @transform_5(%arg0: i32) -> (i32, i32) {
    %c0_i32 = arith.constant 0 : i32
    %c0_i32_0 = arith.constant 0 : i32
    %c0_i32_1 = arith.constant 0 : i32
    return %c0_i32, %c0_i32_0 : i32, i32
  }
  func.func @transform_6(%arg0: i32) -> (i32, i32) {
    %c0_i32 = arith.constant 0 : i32
    %c0_i32_0 = arith.constant 0 : i32
    %c0_i32_1 = arith.constant 0 : i32
    return %c0_i32, %c0_i32_0 : i32, i32
  }
  func.func @transform_7(%arg0: i32) -> (i32, i32) {
    %c0_i32 = arith.constant 0 : i32
    %c0_i32_0 = arith.constant 0 : i32
    %c0_i32_1 = arith.constant 0 : i32
    return %c0_i32, %c0_i32_0 : i32, i32
  }
  func.func @transform_8(%arg0: i32) -> (i32, i32) {
    %c0_i32 = arith.constant 0 : i32
    %c0_i32_0 = arith.constant 0 : i32
    %c0_i32_1 = arith.constant 0 : i32
    return %c0_i32, %c0_i32_0 : i32, i32
  }
  func.func @transform_9(%arg0: i32) -> (i32, i32) {
    %c0_i32 = arith.constant 0 : i32
    %c0_i32_0 = arith.constant 0 : i32
    return %arg0, %c0_i32 : i32, i32
  }
  func.func @transform_10(%arg0: i32) -> (i32, i32) {
    %c0_i32 = arith.constant 0 : i32
    %c0_i32_0 = arith.constant 0 : i32
    return %arg0, %c0_i32 : i32, i32
  }
}

</mosaic_0001>

<bundles_post_ra>
// kernel: prompt_autoencoder_forward.1
= control target key start
LH: loop header
LB: loop body
LE: loop exit
PB: predicated region body
PF: predicated region fallthrough
CT: control target
= control target key end

     0   :  { %vm80_vm0 = vcmask 97280   ;;  %v1412_v0 = vmov 0.0|0.0   ;;  %v1413_v4 = vmov 0.0   ;;  %vm401_vm2 = vcmask 130048   ;;  %s2132_s1 = inlined_call_operand.vmem [shape: f32[144,12], index: 1, kind: input, shape index: {}]   ;;  %s2133_s3 = inlined_call_operand.vmem [shape: f32[72,144], index: 3, kind: input, shape index: {}]   ;;  %s2134_s0 = inlined_call_operand.vmem [shape: f32[128,12], index: 0, kind: input, shape index: {}]   ;;  %s2135_s2 = inlined_call_operand.vmem [shape: f32[1,144], index: 2, kind: input, shape index: {}]   ;;  %s2136_s5 = inlined_call_operand.vmem [shape: f32[144,72], index: 5, kind: input, shape index: {}]   ;;  %s2137_s7 = inlined_call_operand.vmem [shape: f32[12,144], index: 7, kind: input, shape index: {}]   ;;  %s2138_s4 = inlined_call_operand.vmem [shape: f32[1,72], index: 4, kind: input, shape index: {}]   ;;  %s2139_s10 = inlined_call_operand.vmem [shape: f32[128,72], index: 10, kind: output, shape index: {1}]   ;;  %s2140_s6 = inlined_call_operand.vmem [shape: f32[1,144], index: 6, kind: input, shape index: {}]   ;;  %s2141_s8 = inlined_call_operand.vmem [shape: f32[1,12], index: 8, kind: input, shape index: {}]   ;;  %s2142_s9 = inlined_call_operand.vmem [shape: f32[128,12], index: 9, kind: output, shape index: {0}]  }
   0x1   :  { %1311 = vmatprep.subr.bf16.mxu0 %v1412_v0  ;;  %v50_v1 = vld [vmem:[%s2132_s1] sm:$0xff]  ;;  %v51_v2 = vld [vmem:[%s2132_s1 + $0x8] sm:$0xff]  ;;  %vm1478_vm1 = vmpackc.low %vm80_vm0, %vm80_vm0  ;;  %247 = vmatprep.mubr.f32.mxu0 %v1413_v4  ;;  %vm652_vm4 = vcmask 588800  }
   0x2   :  { %v1312_v5 = vpack.c.bf16 %v51_v2, %v50_v1  ;;  %v52_v6 = vld [vmem:[%s2132_s1 + $0x10] sm:$0xff]  ;;  %v53_v7 = vld [vmem:[%s2132_s1 + $0x18] sm:$0xff]  ;;  %v54_v9 = vld [vmem:[%s2132_s1 + $0x20] sm:$0xff] }
   0x3   :  { %v1316_v8 = vpack.c.bf16 %v53_v7, %v52_v6  ;;  %v55_v10 = vld [vmem:[%s2132_s1 + $0x28] sm:$0xff]  ;;  %v379_v12 = vld [vmem:[%s2133_s3 + $0x18] sm:$0xff]  ;;  %vm1509_vm3 = vmpackc.low %vm401_vm2, %vm401_vm2 }
   0x4   :  { %1314 = vmatpush1.bf16.xpose.msk.msra.mxu0 %vm1478_vm1, %v1312_v5  ;;  %v377_v11 = vld [vmem:[%s2133_s3 + $0x8] sm:$0xff]  ;;  %v376_v14 = vld [vmem:[%s2133_s3] sm:$0xff]  ;;  %v378_v16 = vld [vmem:[%s2133_s3 + $0x10] sm:$0xff]  ;;  %v1320_v21 = vpack.c.bf16 %v55_v10, %v54_v9 }
   0x5   :  { %1315 = vmatprep.subr.bf16.mxu0 %v1412_v0  ;;  %v1347_v15 = vpack.c.bf16 %v379_v12, %v377_v11  ;;  %v381_v17 = vld [vmem:[%s2133_s3 + $0x28] sm:$0xff]  ;;  %v383_v18 = vld [vmem:[%s2133_s3 + $0x38] sm:$0xff]  ;;  %v1350_v19 = vpack.c.bf16 %v378_v16, %v376_v14  ;;  %v380_v22 = vld [vmem:[%s2133_s3 + $0x20] sm:$0xff]  ;;  %v70_v11 = vlaneseq }
   0x6   :  { %v1352_v20 = vpack.c.bf16 %v383_v18, %v381_v17  ;;  %v382_v23 = vld [vmem:[%s2133_s3 + $0x30] sm:$0xff]  ;;  %v385_v24 = vld [vmem:[%s2133_s3 + $0x48] sm:$0xff]  ;;  %v387_v25 = vld [vmem:[%s2133_s3 + $0x58] sm:$0xff] }
   0x7   :  { %1349 = vmatprep.subr.msk.bf16.mxu1 %vm1509_vm3, %v1347_v15  ;;  %v56_v26 = vld [vmem:[%s2132_s1 + $0x30] sm:$0xff]  ;;  %v57_v27 = vld [vmem:[%s2132_s1 + $0x38] sm:$0xff]  ;;  %v1355_v28 = vpack.c.bf16 %v382_v23, %v380_v22  ;;  %v1357_v29 = vpack.c.bf16 %v387_v25, %v385_v24  ;;  %v384_v31 = vld [vmem:[%s2133_s3 + $0x40] sm:$0xff]  ;;  %v1706_v12 = vshrl.u32 %v70_v11, 7 }
   0x8   :  { %1351 = vmatpush1.bf16.xpose.msra.mxu1 %v1350_v19  ;;  %v1324_v30 = vpack.c.bf16 %v57_v27, %v56_v26  ;;  %v386_v32 = vld [vmem:[%s2133_s3 + $0x50] sm:$0xff]  ;;  %v389_v33 = vld [vmem:[%s2133_s3 + $0x68] sm:$0xff]  ;;  %v391_v34 = vld [vmem:[%s2133_s3 + $0x78] sm:$0xff] }
   0x9   :  { %1354 = vmatprep.subr.msk.bf16.mxu1 %vm1509_vm3, %v1352_v20  ;;  %v58_v35 = vld [vmem:[%s2132_s1 + $0x40] sm:$0xff]  ;;  %v59_v36 = vld [vmem:[%s2132_s1 + $0x48] sm:$0xff]  ;;  %v1360_v37 = vpack.c.bf16 %v386_v32, %v384_v31  ;;  %v1362_v38 = vpack.c.bf16 %v391_v34, %v389_v33  ;;  %v390_v41 = vld [vmem:[%s2133_s3 + $0x70] sm:$0xff]  ;;  %v72_v14 = vsub.s32 0, %v1706_v12  ;;  %v76_v16 = vsub.s32 1, %v1706_v12 }
   0xa   :  { %v1328_v39 = vpack.c.bf16 %v59_v36, %v58_v35  ;;  %v388_v40 = vld [vmem:[%s2133_s3 + $0x60] sm:$0xff]  ;;  %v60_v42 = vld [vmem:[%s2132_s1 + $0x50] sm:$0xff]  ;;  %v61_v43 = vld [vmem:[%s2132_s1 + $0x58] sm:$0xff] }
   0xb   :  { %v1365_v44 = vpack.c.bf16 %v390_v41, %v388_v40  ;;  %v1332_v45 = vpack.c.bf16 %v61_v43, %v60_v42  ;;  %v62_v46 = vld [vmem:[%s2132_s1 + $0x60] sm:$0xff]  ;;  %v63_v47 = vld [vmem:[%s2132_s1 + $0x68] sm:$0xff]  ;;  %v64_v49 = vld [vmem:[%s2132_s1 + $0x70] sm:$0xff] }
   0xc   :  { %1318 = vmatpush1.bf16.xpose.msk.msra.mxu0 %vm1478_vm1, %v1316_v8  ;;  %v1336_v48 = vpack.c.bf16 %v63_v47, %v62_v46  ;;  %v65_v50 = vld [vmem:[%s2132_s1 + $0x78] sm:$0xff]  ;;  %v66_v52 = vld [vmem:[%s2132_s1 + $0x80] sm:$0xff]  ;;  %v67_v53 = vld [vmem:[%s2132_s1 + $0x88] sm:$0xff] }
   0xd   :  { %1319 = vmatprep.subr.bf16.mxu0 %v1412_v0  ;;  %v1340_v51 = vpack.c.bf16 %v65_v50, %v64_v49  ;;  %v1344_v54 = vpack.c.bf16 %v67_v53, %v66_v52  ;;  %v34_v55 = vld [vmem:[%s2134_s0] sm:$0xff]  ;;  %v35_v56 = vld [vmem:[%s2134_s0 + $0x8] sm:$0xff]  ;;  %v36_v57 = vld [vmem:[%s2134_s0 + $0x10] sm:$0xff] }
   0xe   :  { %v37_v58 = vld [vmem:[%s2134_s0 + $0x18] sm:$0xff]  ;;  %v38_v59 = vld [vmem:[%s2134_s0 + $0x20] sm:$0xff]  ;;  %v39_v60 = vld [vmem:[%s2134_s0 + $0x28] sm:$0xff] }
   0xf   :  { %v40_v61 = vld [vmem:[%s2134_s0 + $0x30] sm:$0xff]  ;;  %v41_v62 = vld [vmem:[%s2134_s0 + $0x38] sm:$0xff]  ;;  %v42_v63 = vld [vmem:[%s2134_s0 + $0x40] sm:$0xff] }
  0x10   :  { %1356 = vmatpush1.bf16.xpose.msra.mxu1 %v1355_v28  ;;  %v43_v1 = vld [vmem:[%s2134_s0 + $0x48] sm:$0xff]  ;;  %v44_v2 = vld [vmem:[%s2134_s0 + $0x50] sm:$0xff]  ;;  %v45_v3 = vld [vmem:[%s2134_s0 + $0x58] sm:$0xff] }
  0x11   :  { %1359 = vmatprep.subr.msk.bf16.mxu1 %vm1509_vm3, %v1357_v29  ;;  %v46_v5 = vld [vmem:[%s2134_s0 + $0x60] sm:$0xff]  ;;  %v47_v6 = vld [vmem:[%s2134_s0 + $0x68] sm:$0xff]  ;;  %v48_v7 = vld [vmem:[%s2134_s0 + $0x70] sm:$0xff] }
  0x12   :  { %v49_v8 = vld [vmem:[%s2134_s0 + $0x78] sm:$0xff]  ;;  %v393_v9 = vld [vmem:[%s2133_s3 + $0x88] sm:$0xff]  ;;  %v392_v10 = vld [vmem:[%s2133_s3 + $0x80] sm:$0xff] }
  0x13   :  { %v68_v15 = vld [vmem:[%s2135_s2] sm:$0x3]  ;;  %v623_v23 = vld [vmem:[%s2136_s5 + $0x8] sm:$0xff]  ;;  %vm1732_vm5 = vmpackc.low %vm652_vm4, %vm652_vm4 }
  0x14   :  { %1322 = vmatpush1.bf16.xpose.msk.msra.mxu0 %vm1478_vm1, %v1320_v21  ;;  %v1715_v17 = vrot.slane %v68_v15, %v72_v14  ;;  %v1719_v18 = vrot.slane %v68_v15, %v76_v16  ;;  %v622_v22 = vld [vmem:[%s2136_s5] sm:$0xff] }
  0x15   :  { %1323 = vmatprep.subr.bf16.mxu0 %v1412_v0  ;;  %v1368_v27 = vpack.c.bf16 %v623_v23, %v622_v22  ;;  %v626_v53 = vld [vmem:[%s2136_s5 + $0x20] sm:$0xff] }
  0x16   :  { %v1875_v31 = vld [vmem:[%s2138_s4] ss:$0 sm:$0xff] }
  0x18   :  { %1361 = vmatpush1.bf16.xpose.msra.mxu1 %v1360_v37 }
  0x19   :  { %1364 = vmatprep.subr.msk.bf16.mxu1 %vm1509_vm3, %v1362_v38  ;;  %v624_v38 = vld [vmem:[%s2136_s5 + $0x10] sm:$0xff] }
  0x1c   :  { %1326 = vmatpush1.bf16.xpose.msk.msra.mxu0 %vm1478_vm1, %v1324_v30 }
  0x1d   :  { %1327 = vmatprep.subr.bf16.mxu0 %v1412_v0 }
  0x20   :  { %1366 = vmatpush1.bf16.xpose.msra.mxu1 %v1365_v44 }
  0x21   :  { %1241 = vmatprep.subr.msk.mxu1 %vm401_vm2, %v393_v9 }
  0x24   :  { %1330 = vmatpush1.bf16.xpose.msk.msra.mxu0 %vm1478_vm1, %v1328_v39  ;;  %v625_v39 = vld [vmem:[%s2136_s5 + $0x18] sm:$0xff] }
  0x25   :  { %1331 = vmatprep.subr.bf16.mxu0 %v1412_v0  ;;  %v1372_v43 = vpack.c.bf16 %v625_v39, %v624_v38 }
  0x28   :  { %494 = vmatpush1.xpose.msra.mxu1 %v392_v10 }
  0x29   :  { %1367 = vmatprep.subr.bf16.mxu1 %v1412_v0 }
  0x2c   :  { %1334 = vmatpush1.bf16.xpose.msk.msra.mxu0 %vm1478_vm1, %v1332_v45 }
  0x2d   :  { %1335 = vmatprep.subr.bf16.mxu0 %v1412_v0 }
  0x34   :  { %1338 = vmatpush1.bf16.xpose.msk.msra.mxu0 %vm1478_vm1, %v1336_v48 }
  0x35   :  { %1339 = vmatprep.subr.bf16.mxu0 %v1412_v0 }
  0x3c   :  { %1342 = vmatpush1.bf16.xpose.msk.msra.mxu0 %vm1478_vm1, %v1340_v51 }
  0x3d   :  { %1343 = vmatprep.subr.bf16.mxu0 %v1412_v0 }
  0x44   :  { %1346 = vmatpush1.bf16.xpose.msk.msra.mxu0 %vm1478_vm1, %v1344_v54  ;;  %v627_v54 = vld [vmem:[%s2136_s5 + $0x28] sm:$0xff] }
  0x4b   :  { %1216 = vmatmul.mubr.msk.f32.vlgmr.msra.gmra.mrb[0].mxu0 %vm80_vm0, %v34_v55 }
  0x4c   :  { %253 = vmatprep.mubr.f32.mxu0 %v1413_v4 }
  0x4f   :  { %1217 = vmatmul.mubr.msk.f32.gmra.mrb[2].mxu0 %vm80_vm0, %v35_v56 }
  0x50   :  { %259 = vmatprep.mubr.f32.mxu0 %v1413_v4 }
  0x53   :  { %1218 = vmatmul.mubr.msk.f32.gmra.mrb[4].mxu0 %vm80_vm0, %v36_v57 }
  0x54   :  { %265 = vmatprep.mubr.f32.mxu0 %v1413_v4 }
  0x57   :  { %1219 = vmatmul.mubr.msk.f32.gmra.mrb[6].mxu0 %vm80_vm0, %v37_v58  ;;  %v1376_v58 = vpack.c.bf16 %v627_v54, %v626_v53 }
  0x58   :  { %271 = vmatprep.mubr.f32.mxu0 %v1413_v4 }
  0x5b   :  { %1220 = vmatmul.mubr.msk.f32.gmra.mrb[8].mxu0 %vm80_vm0, %v38_v59 }
  0x5c   :  { %277 = vmatprep.mubr.f32.mxu0 %v1413_v4 }
  0x5f   :  { %1221 = vmatmul.mubr.msk.f32.gmra.mrb[10].mxu0 %vm80_vm0, %v39_v60 }
  0x60   :  { %283 = vmatprep.mubr.f32.mxu0 %v1413_v4 }
  0x63   :  { %1222 = vmatmul.mubr.msk.f32.gmra.mrb[12].mxu0 %vm80_vm0, %v40_v61 }
  0x64   :  { %289 = vmatprep.mubr.f32.mxu0 %v1413_v4 }
  0x67   :  { %1223 = vmatmul.mubr.msk.f32.gmra.mrb[14].mxu0 %vm80_vm0, %v41_v62 }
  0x68   :  { %295 = vmatprep.mubr.f32.mxu0 %v1413_v4 }
  0x6b   :  { %1224 = vmatmul.mubr.msk.f32.gmra.mrb[16].mxu0 %vm80_vm0, %v42_v63 }
  0x6c   :  { %301 = vmatprep.mubr.f32.mxu0 %v1413_v4 }
  0x6f   :  { %1225 = vmatmul.mubr.msk.f32.gmra.mrb[18].mxu0 %vm80_vm0, %v43_v1 }
  0x70   :  { %307 = vmatprep.mubr.f32.mxu0 %v1413_v4 }
  0x73   :  { %1226 = vmatmul.mubr.msk.f32.gmra.mrb[20].mxu0 %vm80_vm0, %v44_v2 }
  0x74   :  { %313 = vmatprep.mubr.f32.mxu0 %v1413_v4 }
  0x77   :  { %1227 = vmatmul.mubr.msk.f32.gmra.mrb[22].mxu0 %vm80_vm0, %v45_v3 }
  0x78   :  { %319 = vmatprep.mubr.f32.mxu0 %v1413_v4 }
  0x7b   :  { %1228 = vmatmul.mubr.msk.f32.gmra.mrb[24].mxu0 %vm80_vm0, %v46_v5 }
  0x7c   :  { %325 = vmatprep.mubr.f32.mxu0 %v1413_v4 }
  0x7f   :  { %1229 = vmatmul.mubr.msk.f32.gmra.mrb[26].mxu0 %vm80_vm0, %v47_v6  ;;  %v628_v6 = vld [vmem:[%s2136_s5 + $0x30] sm:$0xff] }
  0x80   :  { %331 = vmatprep.mubr.f32.mxu0 %v1413_v4 }
  0x83   :  { %1230 = vmatmul.mubr.msk.f32.gmra.mrb[28].mxu0 %vm80_vm0, %v48_v7  ;;  %v629_v7 = vld [vmem:[%s2136_s5 + $0x38] sm:$0xff] }
  0x84   :  { %337 = vmatprep.mubr.f32.mxu0 %v1413_v4  ;;  %v1380_v11 = vpack.c.bf16 %v629_v7, %v628_v6 }
  0x87   :  { %1231 = vmatmul.mubr.msk.f32.gmra.mrb[30].mxu0 %vm80_vm0, %v49_v8 }
 0x11e   :  { %v249_v19 = vpop.f32.mrb[0].mxu0 }
 0x11f   :  { %v250_v20 = vadd.f32 %v249_v19, %v1715_v17  ;;  %v251_v21 = vpop.f32.mrb[1].mxu0 }
 0x120   :  { %v252_v24 = vadd.f32 %v251_v21, %v1719_v18 }
 0x121   :  { %v344_v28 = vmax.f32 %v250_v20, 0.0 }
 0x122   :  { %v345_v25 = vmax.f32 %v252_v24, 0.0  ;;  %v255_v26 = vpop.f32.mrb[2].mxu0 }
 0x123   :  { %v256_v29 = vadd.f32 %v255_v26, %v1715_v17  ;;  %v257_v30 = vpop.f32.mrb[3].mxu0 }
 0x124   :  { %v258_v32 = vadd.f32 %v257_v30, %v1719_v18  ;;  %1242 = vmatprep.mubr.msk.f32.mxu1 %vm401_vm2, %v345_v25 }
 0x125   :  { %542 = vmatmul.mubr.f32.vlgmr.msra.gmra.mrb[0].mxu1 %v344_v28  ;;  %v346_v35 = vmax.f32 %v256_v29, 0.0  ;;  %v631_v28 = vld [vmem:[%s2136_s5 + $0x48] sm:$0xff] }
 0x126   :  { %v347_v33 = vmax.f32 %v258_v32, 0.0  ;;  %v261_v34 = vpop.f32.mrb[4].mxu0  ;;  %1370 = vmatpush1.bf16.xpose.msk.msra.mxu1 %vm1732_vm5, %v1368_v27  ;;  %v630_v27 = vld [vmem:[%s2136_s5 + $0x40] sm:$0xff] }
 0x127   :  { %v262_v36 = vadd.f32 %v261_v34, %v1715_v17  ;;  %v263_v37 = vpop.f32.mrb[5].mxu0  ;;  %1371 = vmatprep.subr.bf16.mxu1 %v1412_v0 }
 0x128   :  { %v264_v40 = vadd.f32 %v263_v37, %v1719_v18  ;;  %1243 = vmatprep.mubr.msk.f32.mxu1 %vm401_vm2, %v347_v33  ;;  %v1384_v33 = vpack.c.bf16 %v631_v28, %v630_v27 }
 0x129   :  { %547 = vmatmul.mubr.f32.gmra.mrb[2].mxu1 %v346_v35  ;;  %v348_v44 = vmax.f32 %v262_v36, 0.0 }
 0x12a   :  { %v349_v41 = vmax.f32 %v264_v40, 0.0  ;;  %v267_v42 = vpop.f32.mrb[6].mxu0 }
 0x12b   :  { %v268_v45 = vadd.f32 %v267_v42, %v1715_v17  ;;  %v269_v46 = vpop.f32.mrb[7].mxu0 }
 0x12c   :  { %v270_v47 = vadd.f32 %v269_v46, %v1719_v18  ;;  %1244 = vmatprep.mubr.msk.f32.mxu1 %vm401_vm2, %v349_v41 }
 0x12d   :  { %552 = vmatmul.mubr.f32.gmra.mrb[4].mxu1 %v348_v44  ;;  %v350_v50 = vmax.f32 %v268_v45, 0.0  ;;  %v633_v44 = vld [vmem:[%s2136_s5 + $0x58] sm:$0xff] }
 0x12e   :  { %v351_v48 = vmax.f32 %v270_v47, 0.0  ;;  %v273_v49 = vpop.f32.mrb[8].mxu0  ;;  %1374 = vmatpush1.bf16.xpose.msk.msra.mxu1 %vm1732_vm5, %v1372_v43  ;;  %v632_v43 = vld [vmem:[%s2136_s5 + $0x50] sm:$0xff] }
 0x12f   :  { %v274_v51 = vadd.f32 %v273_v49, %v1715_v17  ;;  %v275_v52 = vpop.f32.mrb[9].mxu0  ;;  %1375 = vmatprep.subr.bf16.mxu1 %v1412_v0 }
 0x130   :  { %v276_v55 = vadd.f32 %v275_v52, %v1719_v18  ;;  %1245 = vmatprep.mubr.msk.f32.mxu1 %vm401_vm2, %v351_v48  ;;  %v1388_v48 = vpack.c.bf16 %v633_v44, %v632_v43 }
 0x131   :  { %557 = vmatmul.mubr.f32.gmra.mrb[6].mxu1 %v350_v50  ;;  %v352_v59 = vmax.f32 %v274_v51, 0.0 }
 0x132   :  { %v353_v56 = vmax.f32 %v276_v55, 0.0  ;;  %v279_v57 = vpop.f32.mrb[10].mxu0 }
 0x133   :  { %v280_v60 = vadd.f32 %v279_v57, %v1715_v17  ;;  %v281_v61 = vpop.f32.mrb[11].mxu0 }
 0x134   :  { %v282_v62 = vadd.f32 %v281_v61, %v1719_v18  ;;  %1246 = vmatprep.mubr.msk.f32.mxu1 %vm401_vm2, %v353_v56 }
 0x135   :  { %562 = vmatmul.mubr.f32.gmra.mrb[8].mxu1 %v352_v59  ;;  %v354_v2 = vmax.f32 %v280_v60, 0.0  ;;  %v635_v59 = vld [vmem:[%s2136_s5 + $0x68] sm:$0xff] }
 0x136   :  { %v355_v63 = vmax.f32 %v282_v62, 0.0  ;;  %v285_v1 = vpop.f32.mrb[12].mxu0  ;;  %1378 = vmatpush1.bf16.xpose.msk.msra.mxu1 %vm1732_vm5, %v1376_v58  ;;  %v634_v58 = vld [vmem:[%s2136_s5 + $0x60] sm:$0xff] }
 0x137   :  { %v286_v3 = vadd.f32 %v285_v1, %v1715_v17  ;;  %v287_v5 = vpop.f32.mrb[13].mxu0  ;;  %1379 = vmatprep.subr.bf16.mxu1 %v1412_v0 }
 0x138   :  { %v288_v8 = vadd.f32 %v287_v5, %v1719_v18  ;;  %1247 = vmatprep.mubr.msk.f32.mxu1 %vm401_vm2, %v355_v63  ;;  %v1392_v63 = vpack.c.bf16 %v635_v59, %v634_v58 }
 0x139   :  { %567 = vmatmul.mubr.f32.gmra.mrb[10].mxu1 %v354_v2  ;;  %v356_v15 = vmax.f32 %v286_v3, 0.0 }
 0x13a   :  { %v357_v9 = vmax.f32 %v288_v8, 0.0  ;;  %v291_v10 = vpop.f32.mrb[14].mxu0 }
 0x13b   :  { %v292_v19 = vadd.f32 %v291_v10, %v1715_v17  ;;  %v293_v20 = vpop.f32.mrb[15].mxu0 }
 0x13c   :  { %v294_v21 = vadd.f32 %v293_v20, %v1719_v18  ;;  %1248 = vmatprep.mubr.msk.f32.mxu1 %vm401_vm2, %v357_v9 }
 0x13d   :  { %572 = vmatmul.mubr.f32.gmra.mrb[12].mxu1 %v356_v15  ;;  %v358_v24 = vmax.f32 %v292_v19, 0.0  ;;  %v637_v15 = vld [vmem:[%s2136_s5 + $0x78] sm:$0xff] }
 0x13e   :  { %v359_v22 = vmax.f32 %v294_v21, 0.0  ;;  %v297_v23 = vpop.f32.mrb[16].mxu0  ;;  %1382 = vmatpush1.bf16.xpose.msk.msra.mxu1 %vm1732_vm5, %v1380_v11  ;;  %v636_v11 = vld [vmem:[%s2136_s5 + $0x70] sm:$0xff] }
 0x13f   :  { %v298_v25 = vadd.f32 %v297_v23, %v1715_v17  ;;  %v299_v26 = vpop.f32.mrb[17].mxu0  ;;  %1383 = vmatprep.subr.bf16.mxu1 %v1412_v0 }
 0x140   :  { %v300_v29 = vadd.f32 %v299_v26, %v1719_v18  ;;  %1249 = vmatprep.mubr.msk.f32.mxu1 %vm401_vm2, %v359_v22  ;;  %v1396_v22 = vpack.c.bf16 %v637_v15, %v636_v11 }
 0x141   :  { %577 = vmatmul.mubr.f32.gmra.mrb[14].mxu1 %v358_v24  ;;  %v360_v34 = vmax.f32 %v298_v25, 0.0 }
 0x142   :  { %v361_v30 = vmax.f32 %v300_v29, 0.0  ;;  %v303_v32 = vpop.f32.mrb[18].mxu0  ;;  %v638_v29 = vld [vmem:[%s2136_s5 + $0x80] sm:$0xff] }
 0x143   :  { %v304_v35 = vadd.f32 %v303_v32, %v1715_v17  ;;  %v305_v36 = vpop.f32.mrb[19].mxu0  ;;  %v948_v32 = vld [vmem:[%s2137_s7] sm:$0xff] }
 0x144   :  { %v306_v37 = vadd.f32 %v305_v36, %v1719_v18  ;;  %1250 = vmatprep.mubr.msk.f32.mxu1 %vm401_vm2, %v361_v30  ;;  %v951_v30 = vld [vmem:[%s2137_s7 + $0x18] sm:$0xf] }
 0x145   :  { %582 = vmatmul.mubr.f32.gmra.mrb[16].mxu1 %v360_v34  ;;  %v362_v40 = vmax.f32 %v304_v35, 0.0  ;;  %v950_v34 = vld [vmem:[%s2137_s7 + $0x10] sm:$0xf] }
 0x146   :  { %v363_v38 = vmax.f32 %v306_v37, 0.0  ;;  %v309_v39 = vpop.f32.mrb[20].mxu0  ;;  %1386 = vmatpush1.bf16.xpose.msk.msra.mxu1 %vm1732_vm5, %v1384_v33  ;;  %v1406_v35 = vpack.c.bf16 %v950_v34, %v948_v32 }
 0x147   :  { %v310_v41 = vadd.f32 %v309_v39, %v1715_v17  ;;  %v311_v42 = vpop.f32.mrb[21].mxu0  ;;  %1387 = vmatprep.subr.bf16.mxu1 %v1412_v0 }
 0x148   :  { %v312_v45 = vadd.f32 %v311_v42, %v1719_v18  ;;  %1251 = vmatprep.mubr.msk.f32.mxu1 %vm401_vm2, %v363_v38 }
 0x149   :  { %587 = vmatmul.mubr.f32.gmra.mrb[18].mxu1 %v362_v40  ;;  %v364_v49 = vmax.f32 %v310_v41, 0.0 }
 0x14a   :  { %v365_v46 = vmax.f32 %v312_v45, 0.0  ;;  %v315_v47 = vpop.f32.mrb[22].mxu0 }
 0x14b   :  { %v316_v50 = vadd.f32 %v315_v47, %v1715_v17  ;;  %v317_v51 = vpop.f32.mrb[23].mxu0 }
 0x14c   :  { %v318_v52 = vadd.f32 %v317_v51, %v1719_v18  ;;  %1252 = vmatprep.mubr.msk.f32.mxu1 %vm401_vm2, %v365_v46 }
 0x14d   :  { %592 = vmatmul.mubr.f32.gmra.mrb[20].mxu1 %v364_v49  ;;  %v366_v55 = vmax.f32 %v316_v50, 0.0 }
 0x14e   :  { %v367_v53 = vmax.f32 %v318_v52, 0.0  ;;  %v321_v54 = vpop.f32.mrb[24].mxu0  ;;  %1390 = vmatpush1.bf16.xpose.msk.msra.mxu1 %vm1732_vm5, %v1388_v48 }
 0x14f   :  { %v322_v56 = vadd.f32 %v321_v54, %v1715_v17  ;;  %v323_v57 = vpop.f32.mrb[25].mxu0  ;;  %1391 = vmatprep.subr.bf16.mxu1 %v1412_v0 }
 0x150   :  { %v324_v60 = vadd.f32 %v323_v57, %v1719_v18  ;;  %1253 = vmatprep.mubr.msk.f32.mxu1 %vm401_vm2, %v367_v53 }
 0x151   :  { %597 = vmatmul.mubr.f32.gmra.mrb[22].mxu1 %v366_v55  ;;  %v368_v1 = vmax.f32 %v322_v56, 0.0 }
 0x152   :  { %v369_v61 = vmax.f32 %v324_v60, 0.0  ;;  %v327_v62 = vpop.f32.mrb[26].mxu0 }
 0x153   :  { %v328_v2 = vadd.f32 %v327_v62, %v1715_v17  ;;  %v329_v3 = vpop.f32.mrb[27].mxu0 }
 0x154   :  { %v330_v5 = vadd.f32 %v329_v3, %v1719_v18  ;;  %1254 = vmatprep.mubr.msk.f32.mxu1 %vm401_vm2, %v369_v61 }
 0x155   :  { %602 = vmatmul.mubr.f32.gmra.mrb[24].mxu1 %v368_v1  ;;  %v370_v8 = vmax.f32 %v328_v2, 0.0 }
 0x156   :  { %v371_v6 = vmax.f32 %v330_v5, 0.0  ;;  %v333_v7 = vpop.f32.mrb[28].mxu0  ;;  %1394 = vmatpush1.bf16.xpose.msk.msra.mxu1 %vm1732_vm5, %v1392_v63 }
 0x157   :  { %v334_v9 = vadd.f32 %v333_v7, %v1715_v17  ;;  %v335_v10 = vpop.f32.mrb[29].mxu0  ;;  %1395 = vmatprep.subr.bf16.mxu1 %v1412_v0 }
 0x158   :  { %v336_v19 = vadd.f32 %v335_v10, %v1719_v18  ;;  %1255 = vmatprep.mubr.msk.f32.mxu1 %vm401_vm2, %v371_v6 }
 0x159   :  { %607 = vmatmul.mubr.f32.gmra.mrb[26].mxu1 %v370_v8  ;;  %v372_v23 = vmax.f32 %v334_v9, 0.0 }
 0x15a   :  { %v373_v20 = vmax.f32 %v336_v19, 0.0  ;;  %v339_v21 = vpop.f32.mrb[30].mxu0 }
 0x15b   :  { %v340_v24 = vadd.f32 %v339_v21, %v1715_v17  ;;  %v341_v25 = vpop.f32.mrb[31].mxu0  ;;  %v639_v17 = vld [vmem:[%s2136_s5 + $0x88] sm:$0xff] }
 0x15c   :  { %v342_v26 = vadd.f32 %v341_v25, %v1719_v18  ;;  %1256 = vmatprep.mubr.msk.f32.mxu1 %vm401_vm2, %v373_v20  ;;  %v1400_v18 = vpack.c.bf16 %v639_v17, %v638_v29 }
 0x15d   :  { %612 = vmatmul.mubr.f32.gmra.mrb[28].mxu1 %v372_v23  ;;  %v374_v28 = vmax.f32 %v340_v24, 0.0 }
 0x15e   :  { %v375_v27 = vmax.f32 %v342_v26, 0.0  ;;  %1398 = vmatpush1.bf16.xpose.msk.msra.mxu1 %vm1732_vm5, %v1396_v22 }
 0x15f   :  { %1399 = vmatprep.subr.bf16.mxu1 %v1412_v0  ;;  %v949_v0 = vld [vmem:[%s2137_s7 + $0x8] sm:$0xff] }
 0x160   :  { %1257 = vmatprep.mubr.msk.f32.mxu1 %vm401_vm2, %v375_v27  ;;  %v1403_v33 = vpack.c.bf16 %v951_v30, %v949_v0  ;;  %v640_v27 = vld [vmem:[%s2140_s6] sm:$0x3] }
 0x161   :  { %617 = vmatmul.mubr.f32.gmra.mrb[30].mxu1 %v374_v28  ;;  %v1993_v28 = vrot.slane %v640_v27, %v72_v14 }
 0x162   :  { %819 = vmatprep.mubr.f32.mxu1 %v1413_v4  ;;  %1405 = vmatprep.subr.msk.bf16.mxu0 %vm1509_vm3, %v1403_v33 }
 0x163   :  { %1407 = vmatpush1.bf16.xpose.msra.mxu0 %v1406_v35 }
 0x166   :  { %1402 = vmatpush1.bf16.xpose.msk.msra.mxu1 %vm1732_vm5, %v1400_v18 }
 0x167   :  { %1408 = vmatprep.subr.msk.bf16.mxu1 %vm1509_vm3, %v1403_v33 }
 0x1f8   :  { %v543_v36 = vpop.f32.mrb[0].mxu1 }
 0x1f9   :  { %v544_v37 = vadd.f32 %v1875_v31, %v543_v36  ;;  %v545_v38 = vpop.f32.mrb[1].mxu1 }
 0x1fb   :  { %1158 = vst.msk [vmem:[%s2139_s10] sm:$0xff] %vm652_vm4, %v544_v37  ;;  %1276 = vmatmul.mubr.msk.f32.vlgmr.msra.gmra.mrb[32].mxu1 %vm652_vm4, %v544_v37 }
 0x1fc   :  { %v548_v39 = vpop.f32.mrb[2].mxu1  ;;  %825 = vmatprep.mubr.f32.mxu1 %v1413_v4  ;;  %1409 = vmatpush1.bf16.xpose.msra.mxu1 %v1406_v35 }
 0x1fd   :  { %v549_v13 = vadd.f32 %v1875_v31, %v548_v39  ;;  %v550_v40 = vpop.f32.mrb[3].mxu1 }
 0x1ff   :  { %1159 = vst.msk [vmem:[%s2139_s10 + $0x8] sm:$0xff] %vm652_vm4, %v549_v13  ;;  %1277 = vmatmul.mubr.msk.f32.gmra.mrb[34].mxu1 %vm652_vm4, %v549_v13 }
 0x200   :  { %v553_v41 = vpop.f32.mrb[4].mxu1  ;;  %831 = vmatprep.mubr.f32.mxu1 %v1413_v4 }
 0x201   :  { %v554_v42 = vadd.f32 %v1875_v31, %v553_v41  ;;  %v555_v43 = vpop.f32.mrb[5].mxu1 }
 0x203   :  { %1160 = vst.msk [vmem:[%s2139_s10 + $0x10] sm:$0xff] %vm652_vm4, %v554_v42  ;;  %1278 = vmatmul.mubr.msk.f32.gmra.mrb[36].mxu1 %vm652_vm4, %v554_v42 }
 0x204   :  { %v558_v44 = vpop.f32.mrb[6].mxu1  ;;  %837 = vmatprep.mubr.f32.mxu1 %v1413_v4 }
 0x205   :  { %v559_v45 = vadd.f32 %v1875_v31, %v558_v44  ;;  %v560_v46 = vpop.f32.mrb[7].mxu1 }
 0x207   :  { %1161 = vst.msk [vmem:[%s2139_s10 + $0x18] sm:$0xff] %vm652_vm4, %v559_v45  ;;  %1279 = vmatmul.mubr.msk.f32.gmra.mrb[38].mxu1 %vm652_vm4, %v559_v45 }
 0x208   :  { %v563_v47 = vpop.f32.mrb[8].mxu1  ;;  %843 = vmatprep.mubr.f32.mxu1 %v1413_v4 }
 0x209   :  { %v564_v48 = vadd.f32 %v1875_v31, %v563_v47  ;;  %v565_v49 = vpop.f32.mrb[9].mxu1 }
 0x20b   :  { %1162 = vst.msk [vmem:[%s2139_s10 + $0x20] sm:$0xff] %vm652_vm4, %v564_v48  ;;  %1280 = vmatmul.mubr.msk.f32.gmra.mrb[40].mxu1 %vm652_vm4, %v564_v48 }
 0x20c   :  { %v568_v50 = vpop.f32.mrb[10].mxu1  ;;  %849 = vmatprep.mubr.f32.mxu1 %v1413_v4 }
 0x20d   :  { %v569_v51 = vadd.f32 %v1875_v31, %v568_v50  ;;  %v570_v52 = vpop.f32.mrb[11].mxu1 }
 0x20f   :  { %1163 = vst.msk [vmem:[%s2139_s10 + $0x28] sm:$0xff] %vm652_vm4, %v569_v51  ;;  %1281 = vmatmul.mubr.msk.f32.gmra.mrb[42].mxu1 %vm652_vm4, %v569_v51 }
 0x210   :  { %v573_v53 = vpop.f32.mrb[12].mxu1  ;;  %855 = vmatprep.mubr.f32.mxu1 %v1413_v4 }
 0x211   :  { %v574_v54 = vadd.f32 %v1875_v31, %v573_v53  ;;  %v575_v55 = vpop.f32.mrb[13].mxu1 }
 0x213   :  { %1164 = vst.msk [vmem:[%s2139_s10 + $0x30] sm:$0xff] %vm652_vm4, %v574_v54  ;;  %1282 = vmatmul.mubr.msk.f32.gmra.mrb[44].mxu1 %vm652_vm4, %v574_v54 }
 0x214   :  { %v578_v56 = vpop.f32.mrb[14].mxu1  ;;  %861 = vmatprep.mubr.f32.mxu1 %v1413_v4 }
 0x215   :  { %v579_v57 = vadd.f32 %v1875_v31, %v578_v56  ;;  %v580_v58 = vpop.f32.mrb[15].mxu1 }
 0x217   :  { %1165 = vst.msk [vmem:[%s2139_s10 + $0x38] sm:$0xff] %vm652_vm4, %v579_v57  ;;  %1283 = vmatmul.mubr.msk.f32.gmra.mrb[46].mxu1 %vm652_vm4, %v579_v57 }
 0x218   :  { %v583_v59 = vpop.f32.mrb[16].mxu1  ;;  %867 = vmatprep.mubr.f32.mxu1 %v1413_v4 }
 0x219   :  { %v584_v60 = vadd.f32 %v1875_v31, %v583_v59  ;;  %v585_v61 = vpop.f32.mrb[17].mxu1 }
 0x21b   :  { %1166 = vst.msk [vmem:[%s2139_s10 + $0x40] sm:$0xff] %vm652_vm4, %v584_v60  ;;  %1284 = vmatmul.mubr.msk.f32.gmra.mrb[48].mxu1 %vm652_vm4, %v584_v60 }
 0x21c   :  { %v588_v62 = vpop.f32.mrb[18].mxu1  ;;  %873 = vmatprep.mubr.f32.mxu1 %v1413_v4 }
 0x21d   :  { %v589_v63 = vadd.f32 %v1875_v31, %v588_v62  ;;  %v590_v1 = vpop.f32.mrb[19].mxu1 }
 0x21f   :  { %1167 = vst.msk [vmem:[%s2139_s10 + $0x48] sm:$0xff] %vm652_vm4, %v589_v63  ;;  %1285 = vmatmul.mubr.msk.f32.gmra.mrb[50].mxu1 %vm652_vm4, %v589_v63 }
 0x220   :  { %v593_v2 = vpop.f32.mrb[20].mxu1  ;;  %879 = vmatprep.mubr.f32.mxu1 %v1413_v4 }
 0x221   :  { %v594_v3 = vadd.f32 %v1875_v31, %v593_v2  ;;  %v595_v5 = vpop.f32.mrb[21].mxu1 }
 0x223   :  { %1168 = vst.msk [vmem:[%s2139_s10 + $0x50] sm:$0xff] %vm652_vm4, %v594_v3  ;;  %1286 = vmatmul.mubr.msk.f32.gmra.mrb[52].mxu1 %vm652_vm4, %v594_v3 }
 0x224   :  { %v598_v6 = vpop.f32.mrb[22].mxu1  ;;  %885 = vmatprep.mubr.f32.mxu1 %v1413_v4 }
 0x225   :  { %v599_v7 = vadd.f32 %v1875_v31, %v598_v6  ;;  %v600_v8 = vpop.f32.mrb[23].mxu1 }
 0x227   :  { %1169 = vst.msk [vmem:[%s2139_s10 + $0x58] sm:$0xff] %vm652_vm4, %v599_v7  ;;  %1287 = vmatmul.mubr.msk.f32.gmra.mrb[54].mxu1 %vm652_vm4, %v599_v7 }
 0x228   :  { %v603_v9 = vpop.f32.mrb[24].mxu1  ;;  %891 = vmatprep.mubr.f32.mxu1 %v1413_v4 }
 0x229   :  { %v604_v10 = vadd.f32 %v1875_v31, %v603_v9  ;;  %v605_v11 = vpop.f32.mrb[25].mxu1 }
 0x22b   :  { %1170 = vst.msk [vmem:[%s2139_s10 + $0x60] sm:$0xff] %vm652_vm4, %v604_v10  ;;  %1288 = vmatmul.mubr.msk.f32.gmra.mrb[56].mxu1 %vm652_vm4, %v604_v10 }
 0x22c   :  { %v608_v15 = vpop.f32.mrb[26].mxu1  ;;  %897 = vmatprep.mubr.f32.mxu1 %v1413_v4 }
 0x22d   :  { %v609_v19 = vadd.f32 %v1875_v31, %v608_v15  ;;  %v610_v20 = vpop.f32.mrb[27].mxu1 }
 0x22f   :  { %1171 = vst.msk [vmem:[%s2139_s10 + $0x68] sm:$0xff] %vm652_vm4, %v609_v19  ;;  %1289 = vmatmul.mubr.msk.f32.gmra.mrb[58].mxu1 %vm652_vm4, %v609_v19 }
 0x230   :  { %v613_v21 = vpop.f32.mrb[28].mxu1  ;;  %903 = vmatprep.mubr.f32.mxu1 %v1413_v4 }
 0x231   :  { %v614_v22 = vadd.f32 %v1875_v31, %v613_v21  ;;  %v615_v23 = vpop.f32.mrb[29].mxu1 }
 0x233   :  { %1172 = vst.msk [vmem:[%s2139_s10 + $0x70] sm:$0xff] %vm652_vm4, %v614_v22  ;;  %1290 = vmatmul.mubr.msk.f32.gmra.mrb[60].mxu1 %vm652_vm4, %v614_v22 }
 0x234   :  { %v618_v24 = vpop.f32.mrb[30].mxu1  ;;  %909 = vmatprep.mubr.f32.mxu1 %v1413_v4  ;;  %v1997_v4 = vrot.slane %v640_v27, %v76_v16 }
 0x235   :  { %v619_v25 = vadd.f32 %v1875_v31, %v618_v24  ;;  %v620_v26 = vpop.f32.mrb[31].mxu1 }
 0x237   :  { %1173 = vst.msk [vmem:[%s2139_s10 + $0x78] sm:$0xff] %vm652_vm4, %v619_v25  ;;  %1291 = vmatmul.mubr.msk.f32.gmra.mrb[62].mxu1 %vm652_vm4, %v619_v25 }
 0x2ce   :  { %v821_v29 = vpop.f32.mrb[32].mxu1 }
 0x2cf   :  { %v822_v17 = vadd.f32 %v821_v29, %v1993_v28  ;;  %v823_v18 = vpop.f32.mrb[33].mxu1 }
 0x2d0   :  { %v824_v0 = vadd.f32 %v823_v18, %v1997_v4 }
 0x2d1   :  { %v916_v33 = vmax.f32 %v822_v17, 0.0 }
 0x2d2   :  { %v917_v30 = vmax.f32 %v824_v0, 0.0  ;;  %v827_v32 = vpop.f32.mrb[34].mxu1 }
 0x2d3   :  { %v828_v34 = vadd.f32 %v827_v32, %v1993_v28  ;;  %v829_v35 = vpop.f32.mrb[35].mxu1 }
 0x2d4   :  { %v830_v31 = vadd.f32 %v829_v35, %v1997_v4  ;;  %1295 = vmatprep.mubr.msk.f32.mxu0 %vm401_vm2, %v917_v30 }
 0x2d5   :  { %1078 = vmatmul.mubr.f32.vlgmr.msra.gmra.mrb[32].mxu0 %v916_v33  ;;  %v918_v16 = vmax.f32 %v828_v34, 0.0 }
 0x2d6   :  { %v919_v12 = vmax.f32 %v830_v31, 0.0  ;;  %v833_v14 = vpop.f32.mrb[36].mxu1 }
 0x2d7   :  { %v834_v36 = vadd.f32 %v833_v14, %v1993_v28  ;;  %v835_v37 = vpop.f32.mrb[37].mxu1 }
 0x2d8   :  { %v836_v38 = vadd.f32 %v835_v37, %v1997_v4  ;;  %1296 = vmatprep.mubr.msk.f32.mxu0 %vm401_vm2, %v919_v12 }
 0x2d9   :  { %1083 = vmatmul.mubr.f32.gmra.mrb[34].mxu0 %v918_v16  ;;  %v920_v40 = vmax.f32 %v834_v36, 0.0 }
 0x2da   :  { %v921_v39 = vmax.f32 %v836_v38, 0.0  ;;  %v839_v13 = vpop.f32.mrb[38].mxu1 }
 0x2db   :  { %v840_v41 = vadd.f32 %v839_v13, %v1993_v28  ;;  %v841_v42 = vpop.f32.mrb[39].mxu1 }
 0x2dc   :  { %v842_v43 = vadd.f32 %v841_v42, %v1997_v4  ;;  %1297 = vmatprep.mubr.msk.f32.mxu0 %vm401_vm2, %v921_v39 }
 0x2dd   :  { %1088 = vmatmul.mubr.f32.gmra.mrb[36].mxu0 %v920_v40  ;;  %v922_v46 = vmax.f32 %v840_v41, 0.0 }
 0x2de   :  { %v923_v44 = vmax.f32 %v842_v43, 0.0  ;;  %v845_v45 = vpop.f32.mrb[40].mxu1 }
 0x2df   :  { %v846_v47 = vadd.f32 %v845_v45, %v1993_v28  ;;  %v847_v48 = vpop.f32.mrb[41].mxu1 }
 0x2e0   :  { %v848_v49 = vadd.f32 %v847_v48, %v1997_v4  ;;  %1298 = vmatprep.mubr.msk.f32.mxu0 %vm401_vm2, %v923_v44 }
 0x2e1   :  { %1093 = vmatmul.mubr.f32.gmra.mrb[38].mxu0 %v922_v46  ;;  %v924_v52 = vmax.f32 %v846_v47, 0.0 }
 0x2e2   :  { %v925_v50 = vmax.f32 %v848_v49, 0.0  ;;  %v851_v51 = vpop.f32.mrb[42].mxu1 }
 0x2e3   :  { %v852_v53 = vadd.f32 %v851_v51, %v1993_v28  ;;  %v853_v54 = vpop.f32.mrb[43].mxu1 }
 0x2e4   :  { %v854_v55 = vadd.f32 %v853_v54, %v1997_v4  ;;  %1299 = vmatprep.mubr.msk.f32.mxu0 %vm401_vm2, %v925_v50 }
 0x2e5   :  { %1098 = vmatmul.mubr.f32.gmra.mrb[40].mxu0 %v924_v52  ;;  %v926_v58 = vmax.f32 %v852_v53, 0.0 }
 0x2e6   :  { %v927_v56 = vmax.f32 %v854_v55, 0.0  ;;  %v857_v57 = vpop.f32.mrb[44].mxu1 }
 0x2e7   :  { %v858_v59 = vadd.f32 %v857_v57, %v1993_v28  ;;  %v859_v60 = vpop.f32.mrb[45].mxu1 }
 0x2e8   :  { %v860_v61 = vadd.f32 %v859_v60, %v1997_v4  ;;  %1300 = vmatprep.mubr.msk.f32.mxu0 %vm401_vm2, %v927_v56  ;;  %v2050_v56 = vld [vmem:[%s2141_s8] ss:$0 sm:$0xff] }
 0x2e9   :  { %1103 = vmatmul.mubr.f32.gmra.mrb[42].mxu0 %v926_v58  ;;  %v928_v1 = vmax.f32 %v858_v59, 0.0 }
 0x2ea   :  { %v929_v62 = vmax.f32 %v860_v61, 0.0  ;;  %v863_v63 = vpop.f32.mrb[46].mxu1 }
 0x2eb   :  { %v864_v2 = vadd.f32 %v863_v63, %v1993_v28  ;;  %v865_v3 = vpop.f32.mrb[47].mxu1 }
 0x2ec   :  { %v866_v5 = vadd.f32 %v865_v3, %v1997_v4  ;;  %1301 = vmatprep.mubr.msk.f32.mxu0 %vm401_vm2, %v929_v62 }
 0x2ed   :  { %1108 = vmatmul.mubr.f32.gmra.mrb[44].mxu0 %v928_v1  ;;  %v930_v8 = vmax.f32 %v864_v2, 0.0 }
 0x2ee   :  { %v931_v6 = vmax.f32 %v866_v5, 0.0  ;;  %v869_v7 = vpop.f32.mrb[48].mxu1 }
 0x2ef   :  { %v870_v9 = vadd.f32 %v869_v7, %v1993_v28  ;;  %v871_v10 = vpop.f32.mrb[49].mxu1 }
 0x2f0   :  { %v872_v11 = vadd.f32 %v871_v10, %v1997_v4  ;;  %1302 = vmatprep.mubr.msk.f32.mxu0 %vm401_vm2, %v931_v6 }
 0x2f1   :  { %1113 = vmatmul.mubr.f32.gmra.mrb[46].mxu0 %v930_v8  ;;  %v932_v20 = vmax.f32 %v870_v9, 0.0 }
 0x2f2   :  { %v933_v15 = vmax.f32 %v872_v11, 0.0  ;;  %v875_v19 = vpop.f32.mrb[50].mxu1 }
 0x2f3   :  { %v876_v21 = vadd.f32 %v875_v19, %v1993_v28  ;;  %v877_v22 = vpop.f32.mrb[51].mxu1 }
 0x2f4   :  { %v878_v23 = vadd.f32 %v877_v22, %v1997_v4  ;;  %1303 = vmatprep.mubr.msk.f32.mxu0 %vm401_vm2, %v933_v15 }
 0x2f5   :  { %1118 = vmatmul.mubr.f32.gmra.mrb[48].mxu0 %v932_v20  ;;  %v934_v26 = vmax.f32 %v876_v21, 0.0 }
 0x2f6   :  { %v935_v24 = vmax.f32 %v878_v23, 0.0  ;;  %v881_v25 = vpop.f32.mrb[52].mxu1 }
 0x2f7   :  { %v882_v27 = vadd.f32 %v881_v25, %v1993_v28  ;;  %v883_v29 = vpop.f32.mrb[53].mxu1 }
 0x2f8   :  { %v884_v17 = vadd.f32 %v883_v29, %v1997_v4  ;;  %1304 = vmatprep.mubr.msk.f32.mxu0 %vm401_vm2, %v935_v24 }
 0x2f9   :  { %1123 = vmatmul.mubr.f32.gmra.mrb[50].mxu0 %v934_v26  ;;  %v936_v30 = vmax.f32 %v882_v27, 0.0 }
 0x2fa   :  { %v937_v18 = vmax.f32 %v884_v17, 0.0  ;;  %v887_v0 = vpop.f32.mrb[54].mxu1 }
 0x2fb   :  { %v888_v32 = vadd.f32 %v887_v0, %v1993_v28  ;;  %v889_v33 = vpop.f32.mrb[55].mxu1 }
 0x2fc   :  { %v890_v34 = vadd.f32 %v889_v33, %v1997_v4  ;;  %1305 = vmatprep.mubr.msk.f32.mxu0 %vm401_vm2, %v937_v18 }
 0x2fd   :  { %1128 = vmatmul.mubr.f32.gmra.mrb[52].mxu0 %v936_v30  ;;  %v938_v12 = vmax.f32 %v888_v32, 0.0 }
 0x2fe   :  { %v939_v35 = vmax.f32 %v890_v34, 0.0  ;;  %v893_v31 = vpop.f32.mrb[56].mxu1 }
 0x2ff   :  { %v894_v14 = vadd.f32 %v893_v31, %v1993_v28  ;;  %v895_v16 = vpop.f32.mrb[57].mxu1 }
 0x300   :  { %v896_v36 = vadd.f32 %v895_v16, %v1997_v4  ;;  %1306 = vmatprep.mubr.msk.f32.mxu0 %vm401_vm2, %v939_v35 }
 0x301   :  { %1133 = vmatmul.mubr.f32.gmra.mrb[54].mxu0 %v938_v12  ;;  %v940_v39 = vmax.f32 %v894_v14, 0.0 }
 0x302   :  { %v941_v37 = vmax.f32 %v896_v36, 0.0  ;;  %v899_v38 = vpop.f32.mrb[58].mxu1 }
 0x303   :  { %v900_v13 = vadd.f32 %v899_v38, %v1993_v28  ;;  %v901_v40 = vpop.f32.mrb[59].mxu1 }
 0x304   :  { %v902_v41 = vadd.f32 %v901_v40, %v1997_v4  ;;  %1307 = vmatprep.mubr.msk.f32.mxu0 %vm401_vm2, %v941_v37 }
 0x305   :  { %1138 = vmatmul.mubr.f32.gmra.mrb[56].mxu0 %v940_v39  ;;  %v942_v44 = vmax.f32 %v900_v13, 0.0 }
 0x306   :  { %v943_v42 = vmax.f32 %v902_v41, 0.0  ;;  %v905_v43 = vpop.f32.mrb[60].mxu1 }
 0x307   :  { %v906_v45 = vadd.f32 %v905_v43, %v1993_v28  ;;  %v907_v46 = vpop.f32.mrb[61].mxu1 }
 0x308   :  { %v908_v47 = vadd.f32 %v907_v46, %v1997_v4  ;;  %1308 = vmatprep.mubr.msk.f32.mxu1 %vm401_vm2, %v943_v42 }
 0x309   :  { %1143 = vmatmul.mubr.f32.vlgmr.msra.gmra.mrb[64].mxu1 %v942_v44  ;;  %v944_v50 = vmax.f32 %v906_v45, 0.0 }
 0x30a   :  { %v945_v48 = vmax.f32 %v908_v47, 0.0  ;;  %v911_v49 = vpop.f32.mrb[62].mxu1 }
 0x30b   :  { %v912_v51 = vadd.f32 %v911_v49, %v1993_v28  ;;  %v913_v52 = vpop.f32.mrb[63].mxu1 }
 0x30c   :  { %v914_v53 = vadd.f32 %v913_v52, %v1997_v4  ;;  %1309 = vmatprep.mubr.msk.f32.mxu1 %vm401_vm2, %v945_v48 }
 0x30d   :  { %1148 = vmatmul.mubr.f32.gmra.mrb[66].mxu1 %v944_v50  ;;  %v946_v55 = vmax.f32 %v912_v51, 0.0 }
 0x30e   :  { %v947_v54 = vmax.f32 %v914_v53, 0.0 }
 0x310   :  { %1310 = vmatprep.mubr.msk.f32.mxu1 %vm401_vm2, %v947_v54 }
 0x311   :  { %1153 = vmatmul.mubr.f32.gmra.mrb[68].mxu1 %v946_v55 }
 0x3a8   :  { %v1079_v57 = vpop.f32.mrb[32].mxu0 }
 0x3a9   :  { %v1080_v58 = vadd.f32 %v2050_v56, %v1079_v57  ;;  %v1081_v28 = vpop.f32.mrb[33].mxu0 }
 0x3ab   :  { %1174 = vst.msk [vmem:[%s2142_s9] sm:$0xff] %vm80_vm0, %v1080_v58 }
 0x3ac   :  { %v1084_v4 = vpop.f32.mrb[34].mxu0 }
 0x3ad   :  { %v1085_v59 = vadd.f32 %v2050_v56, %v1084_v4  ;;  %v1086_v60 = vpop.f32.mrb[35].mxu0 }
 0x3af   :  { %1175 = vst.msk [vmem:[%s2142_s9 + $0x8] sm:$0xff] %vm80_vm0, %v1085_v59 }
 0x3b0   :  { %v1089_v61 = vpop.f32.mrb[36].mxu0 }
 0x3b1   :  { %v1090_v62 = vadd.f32 %v2050_v56, %v1089_v61  ;;  %v1091_v63 = vpop.f32.mrb[37].mxu0 }
 0x3b3   :  { %1176 = vst.msk [vmem:[%s2142_s9 + $0x10] sm:$0xff] %vm80_vm0, %v1090_v62 }
 0x3b4   :  { %v1094_v1 = vpop.f32.mrb[38].mxu0 }
 0x3b5   :  { %v1095_v2 = vadd.f32 %v2050_v56, %v1094_v1  ;;  %v1096_v3 = vpop.f32.mrb[39].mxu0 }
 0x3b7   :  { %1177 = vst.msk [vmem:[%s2142_s9 + $0x18] sm:$0xff] %vm80_vm0, %v1095_v2 }
 0x3b8   :  { %v1099_v5 = vpop.f32.mrb[40].mxu0 }
 0x3b9   :  { %v1100_v6 = vadd.f32 %v2050_v56, %v1099_v5  ;;  %v1101_v7 = vpop.f32.mrb[41].mxu0 }
 0x3bb   :  { %1178 = vst.msk [vmem:[%s2142_s9 + $0x20] sm:$0xff] %vm80_vm0, %v1100_v6 }
 0x3bc   :  { %v1104_v8 = vpop.f32.mrb[42].mxu0 }
 0x3bd   :  { %v1105_v9 = vadd.f32 %v2050_v56, %v1104_v8  ;;  %v1106_v10 = vpop.f32.mrb[43].mxu0 }
 0x3bf   :  { %1179 = vst.msk [vmem:[%s2142_s9 + $0x28] sm:$0xff] %vm80_vm0, %v1105_v9 }
 0x3c0   :  { %v1109_v11 = vpop.f32.mrb[44].mxu0 }
 0x3c1   :  { %v1110_v15 = vadd.f32 %v2050_v56, %v1109_v11  ;;  %v1111_v19 = vpop.f32.mrb[45].mxu0 }
 0x3c3   :  { %1180 = vst.msk [vmem:[%s2142_s9 + $0x30] sm:$0xff] %vm80_vm0, %v1110_v15 }
 0x3c4   :  { %v1114_v20 = vpop.f32.mrb[46].mxu0 }
 0x3c5   :  { %v1115_v21 = vadd.f32 %v2050_v56, %v1114_v20  ;;  %v1116_v22 = vpop.f32.mrb[47].mxu0 }
 0x3c7   :  { %1181 = vst.msk [vmem:[%s2142_s9 + $0x38] sm:$0xff] %vm80_vm0, %v1115_v21 }
 0x3c8   :  { %v1119_v23 = vpop.f32.mrb[48].mxu0 }
 0x3c9   :  { %v1120_v24 = vadd.f32 %v2050_v56, %v1119_v23  ;;  %v1121_v25 = vpop.f32.mrb[49].mxu0 }
 0x3cb   :  { %1182 = vst.msk [vmem:[%s2142_s9 + $0x40] sm:$0xff] %vm80_vm0, %v1120_v24 }
 0x3cc   :  { %v1124_v26 = vpop.f32.mrb[50].mxu0 }
 0x3cd   :  { %v1125_v27 = vadd.f32 %v2050_v56, %v1124_v26  ;;  %v1126_v29 = vpop.f32.mrb[51].mxu0 }
 0x3cf   :  { %1183 = vst.msk [vmem:[%s2142_s9 + $0x48] sm:$0xff] %vm80_vm0, %v1125_v27 }
 0x3d0   :  { %v1129_v17 = vpop.f32.mrb[52].mxu0 }
 0x3d1   :  { %v1130_v18 = vadd.f32 %v2050_v56, %v1129_v17  ;;  %v1131_v0 = vpop.f32.mrb[53].mxu0 }
 0x3d3   :  { %1184 = vst.msk [vmem:[%s2142_s9 + $0x50] sm:$0xff] %vm80_vm0, %v1130_v18 }
 0x3d4   :  { %v1134_v30 = vpop.f32.mrb[54].mxu0 }
 0x3d5   :  { %v1135_v32 = vadd.f32 %v2050_v56, %v1134_v30  ;;  %v1136_v33 = vpop.f32.mrb[55].mxu0 }
 0x3d7   :  { %1185 = vst.msk [vmem:[%s2142_s9 + $0x58] sm:$0xff] %vm80_vm0, %v1135_v32 }
 0x3d8   :  { %v1139_v34 = vpop.f32.mrb[56].mxu0 }
 0x3d9   :  { %v1140_v35 = vadd.f32 %v2050_v56, %v1139_v34  ;;  %v1141_v31 = vpop.f32.mrb[57].mxu0 }
 0x3db   :  { %1186 = vst.msk [vmem:[%s2142_s9 + $0x60] sm:$0xff] %vm80_vm0, %v1140_v35 }
 0x3dc   :  { %v1144_v12 = vpop.f32.mrb[64].mxu1 }
 0x3dd   :  { %v1145_v14 = vadd.f32 %v2050_v56, %v1144_v12  ;;  %v1146_v16 = vpop.f32.mrb[65].mxu1 }
 0x3df   :  { %1187 = vst.msk [vmem:[%s2142_s9 + $0x68] sm:$0xff] %vm80_vm0, %v1145_v14 }
 0x3e0   :  { %v1149_v36 = vpop.f32.mrb[66].mxu1 }
 0x3e1   :  { %v1150_v37 = vadd.f32 %v2050_v56, %v1149_v36  ;;  %v1151_v38 = vpop.f32.mrb[67].mxu1 }
 0x3e3   :  { %1188 = vst.msk [vmem:[%s2142_s9 + $0x70] sm:$0xff] %vm80_vm0, %v1150_v37 }
 0x3e4   :  { %v1154_v39 = vpop.f32.mrb[68].mxu1 }
 0x3e5   :  { %v1155_v13 = vadd.f32 %v2050_v56, %v1154_v39  ;;  %v1156_v40 = vpop.f32.mrb[69].mxu1 }
 0x3e7   :  { %1189 = vst.msk [vmem:[%s2142_s9 + $0x78] sm:$0xff] %vm80_vm0, %v1155_v13 }

</bundles_post_ra>
